<compile_context>
chip_gen: v5e
topology: v5e:2x2
jax: 0.10.0
libtpu: 0.0.40
codegen_flags: <defaults>
</compile_context>

<pallas_src>
import numpy as np
import jax
import jax.numpy as jnp
from jax.experimental import pallas as pl
from jax.experimental.pallas import tpu as pltpu


# ----------------------------------------------------------------------------
# Pallas kernel: out = q (*) q_noise on the lane-dense flattened layout.
#   q_ref : (T_BLK, L)  with L = 4*ns_pad, lanes interleaved as (joint, w/x/y/z)
#   n_ref : (8, L)      pre-masked, sign-folded coefficient rows
#                       [N_0, N_+1, N_-1, N_+2, N_-2, N_+3, N_-3, 0-pad]
#   o_ref : (T_BLK, L)
# Pure rolls + multiply-adds: no iota, no compares, no selects per data vreg.
# ----------------------------------------------------------------------------
def quat_mul_kernel(q_ref, n_ref, o_ref):
    q = q_ref[...].astype(jnp.float32)
    L = q.shape[-1]
    n = n_ref[...]                        # (8, L); resident, fetched once

    out = q * n[0:1]                                          # shift  0
    out = out + pltpu.roll(q, shift=1,     axis=1) * n[1:2]   # shift +1
    out = out + pltpu.roll(q, shift=L - 1, axis=1) * n[2:3]   # shift -1
    out = out + pltpu.roll(q, shift=2,     axis=1) * n[3:4]   # shift +2
    out = out + pltpu.roll(q, shift=L - 2, axis=1) * n[4:5]   # shift -2
    out = out + pltpu.roll(q, shift=3,     axis=1) * n[5:6]   # shift +3
    out = out + pltpu.roll(q, shift=L - 3, axis=1) * n[6:7]   # shift -3
    o_ref[...] = out.astype(o_ref.dtype)


# ----------------------------------------------------------------------------
# Time-block selection.
# ----------------------------------------------------------------------------
def _pick_time_block(ts):
    # Short sequences: one block — per-grid-step overhead dominates the tiny
    # (<~0.5 MiB) HBM traffic.
    if ts <= 512:
        return ts, 1
    # Longer sequences: at least 4 blocks so v7x's two TensorCores each get
    # >= 2 "parallel" blocks (per-core pipelining), 8-row aligned, capped at
    # 2048 rows (~1 MiB at 128 lanes).  Double-buffered in+out stays ~4 MiB,
    # far under v7x's 32 MiB scoped-VMEM default; on v5e/v6e these block sizes
    # sit in the measured >=85% HBM-roofline regime.
    rows = min(2048, ((-(-ts // 4)) + 7) // 8 * 8)
    return rows, -(-ts // rows)


# ----------------------------------------------------------------------------
# Wrapper: lane padding guard + noise coefficient rows + pallas_call.
# ----------------------------------------------------------------------------
def quat_mul_pallas(q, q_n):
    """Hamilton product q (*) q_n.  q: (ts, ns, 4), q_n: (1, ns, 4) -> (ts, ns, 4)."""
    ts, ns, ds = q.shape
    assert ds == 4 and q_n.shape[-2:] == (ns, 4)
    q_n = q_n.reshape(1, ns, 4)

    # Pad joints so L = 4*ns is a multiple of 128: full vregs, unmasked stores,
    # single-vreg lane rolls.  Padded joints (zero noise coeffs) are sliced off.
    ns_pad = max(32, ((ns + 31) // 32) * 32)
    if ns_pad != ns:
        q = jnp.pad(q, ((0, 0), (0, ns_pad - ns), (0, 0)))
        q_n = jnp.pad(q_n, ((0, 0), (0, ns_pad - ns), (0, 0)))
    L = 4 * ns_pad

    # 7 sign-folded, pre-masked coefficient rows (one per lane shift) for
    #   out[4j+c] = sum_s q[4j+c-s] * N_s[4j+c]
    # plus one zero row to pad to a full 8-sublane tile.  Tiny (8*L f32);
    # stays resident in VMEM via a constant index map.
    w2, x2, y2, z2 = (q_n[0, :, c].astype(jnp.float32) for c in range(4))
    zero = jnp.zeros_like(w2)
    n_rows = jnp.stack([
        jnp.stack([  w2,   w2,   w2,   w2], axis=-1),   # shift  0
        jnp.stack([zero,   x2,  -z2,  -x2], axis=-1),   # shift +1
        jnp.stack([ -x2,   z2,   x2, zero], axis=-1),   # shift -1
        jnp.stack([zero, zero,   y2,   y2], axis=-1),   # shift +2
        jnp.stack([ -y2,  -y2, zero, zero], axis=-1),   # shift -2
        jnp.stack([zero, zero, zero,   z2], axis=-1),   # shift +3
        jnp.stack([ -z2, zero, zero, zero], axis=-1),   # shift -3
        jnp.stack([zero, zero, zero, zero], axis=-1),   # pad to 8 sublanes
    ], axis=0).reshape(8, L)

    # Free reinterpretation of the natural (ts, ns_pad, 4) buffer as (ts, L).
    q2d = q.reshape(ts, L)
    rows, n_blocks = _pick_time_block(ts)

    out2d = pl.pallas_call(
        quat_mul_kernel,
        out_shape=jax.ShapeDtypeStruct((ts, L), q.dtype),
        grid_spec=pl.GridSpec(
            grid=(n_blocks,),
            in_specs=[
                pl.BlockSpec((rows, L), lambda i: (i, 0)),
                pl.BlockSpec((8, L), lambda i: (0, 0)),   # resident noise rows
            ],
            out_specs=pl.BlockSpec((rows, L), lambda i: (i, 0)),
        ),
        compiler_params=pltpu.CompilerParams(
            dimension_semantics=("parallel",),            # time blocks independent
        ),
    )(q2d, n_rows)

    out = out2d.reshape(ts, ns_pad, 4)
    if ns_pad != ns:
        out = out[:, :ns, :]
    return out


# ----------------------------------------------------------------------------
# Bingham(M, Z) sampler (plain JAX glue): ACG rejection sampler (Kent–Ganeiber).
# TODO(synk): data-dependent rejection sampling has no clean single-kernel Pallas
#             formulation; it stays in plain JAX (tiny cost: (1, ns) samples).
# ----------------------------------------------------------------------------
def _solve_b(lam, d=4):
    f = lambda b: np.sum(1.0 / (b + 2.0 * lam)) - 1.0
    lo, hi = 1e-8, float(d)
    for _ in range(200):
        mid = 0.5 * (lo + hi)
        if f(mid) > 0.0:
            lo = mid
        else:
            hi = mid
    return 0.5 * (lo + hi)


def _bingham_sample(key, M, lam, omega, m_star, mode_idx, sample_shape, n_prop):
    d = 4
    n = int(np.prod(sample_shape))
    k1, k2 = jax.random.split(key)
    y = jax.random.normal(k1, (n, n_prop, d), jnp.float32) / jnp.sqrt(omega)
    x = y / jnp.linalg.norm(y, axis=-1, keepdims=True)
    f_star = jnp.exp(-jnp.sum(lam * x * x, axis=-1))
    g_star = jnp.sum(omega * x * x, axis=-1) ** (-d / 2.0)
    u = jax.random.uniform(k2, (n, n_prop))
    accept = u < f_star / (m_star * g_star)

    idx = jnp.argmax(accept, axis=-1)
    chosen = jnp.take_along_axis(x, idx[:, None, None], axis=1)[:, 0, :]
    mode = jnp.zeros((d,), jnp.float32).at[mode_idx].set(1.0)
    chosen = jnp.where(jnp.any(accept, axis=-1)[:, None], chosen, mode)
    samples = chosen @ M                       # eigenbasis -> ambient (rows of M)
    return samples.reshape(tuple(sample_shape) + (d,))


# ----------------------------------------------------------------------------
# MotionNoiseTransform: constructor-time setup (z static, as in the nn.Module),
# one jitted forward fusing sampler + noise rows + Pallas kernel.
# ----------------------------------------------------------------------------
def make_motion_noise_transform(z, n_prop=64):
    d = 4
    M = np.array([[0, 1, 0, 0.0],
                  [0, 0, 1, 0.0],
                  [0, 0, 0, 1.0],
                  [1, 0, 0, 0.0]], np.float32)
    Z = np.array([-z, -z, -z, 0.0], np.float32)
    lam = -Z                                   # >= 0, zero at the mode axis
    b = _solve_b(lam, d)
    omega = (1.0 + 2.0 * lam / b).astype(np.float32)
    m_star = float(np.exp(-(d - b) / 2.0) * (d / b) ** (d / 2.0))
    mode_idx = int(np.argmax(Z))

    @jax.jit
    def forward(key, q):
        ts, ns, ds = q.shape
        q_n = _bingham_sample(key, jnp.asarray(M), jnp.asarray(lam),
                              jnp.asarray(omega), m_star, mode_idx,
                              (1, ns), n_prop)                    # (1, ns, 4)
        return quat_mul_pallas(q, q_n), q_n

    return forward


def quat_mul_ref(q, q_n):
    w1, x1, y1, z1 = [q[..., i] for i in range(4)]
    w2, x2, y2, z2 = [q_n[..., i] for i in range(4)]
    return jnp.stack([
        w1 * w2 - x1 * x2 - y1 * y2 - z1 * z2,
        w1 * x2 + x1 * w2 + y1 * z2 - z1 * y2,
        w1 * y2 - x1 * z2 + y1 * w2 + z1 * x2,
        w1 * z2 + x1 * y2 - y1 * x2 + z1 * w2,
    ], axis=-1)


if __name__ == "__main__":
    key = jax.random.PRNGKey(0)
    k_q, k_noise, k_q2 = jax.random.split(key, 3)

    transform = make_motion_noise_transform(z=10.0)

    # H3.6M-style skeleton: 32 joints -> lane width 4*32 = 128; whole sequence
    # fits one block (grid (1,)).
    ts, ns = 128, 32
    q = jax.random.normal(k_q, (ts, ns, 4), jnp.float32)
    q = q / jnp.linalg.norm(q, axis=-1, keepdims=True)
    out, q_n = transform(k_noise, q)
    out = jax.block_until_ready(out)
    ref = quat_mul_ref(q, q_n)
    assert out.shape == (ts, ns, 4)
    assert out.dtype == q.dtype
    assert jnp.allclose(out, ref, atol=1e-5, rtol=1e-5)

    # Longer sequence: exercises the multi-block "parallel" grid (4 blocks of 512).
    ts2 = 2048
    q_big = jax.random.normal(k_q2, (ts2, ns, 4), jnp.float32)
    q_big = q_big / jnp.linalg.norm(q_big, axis=-1, keepdims=True)
    out_big, q_n2 = transform(k_noise, q_big)
    out_big = jax.block_until_ready(out_big)
    assert jnp.allclose(out_big, quat_mul_ref(q_big, q_n2), atol=1e-5, rtol=1e-5)

    # Non-multiple-of-32 joint count: exercises the lane-padding guard.
    ns3 = 22
    q_odd = jax.random.normal(k_q, (64, ns3, 4), jnp.float32)
    q_odd = q_odd / jnp.linalg.norm(q_odd, axis=-1, keepdims=True)
    out_odd, q_n3 = transform(k_noise, q_odd)
    out_odd = jax.block_until_ready(out_odd)
    assert out_odd.shape == (64, ns3, 4)
    assert jnp.allclose(out_odd, quat_mul_ref(q_odd, q_n3), atol=1e-5, rtol=1e-5)

    print("KERNEL_OK")
</pallas_src>

<mosaic_0001>
module attributes {stable_mosaic.version = 11 : i64} {
  func.func @quat_mul_kernel(%arg0: i32, %arg1: memref<128x128xf32, #tpu.memory_space<vmem>>, %arg2: memref<8x128xf32, #tpu.memory_space<vmem>>, %arg3: memref<128x128xf32, #tpu.memory_space<vmem>>) attributes {dimension_semantics = [#tpu.dimension_semantics<parallel>], iteration_bounds = array<i64: 1>, scalar_prefetch = 0 : i64, scratch_operands = 0 : i64, tpu.core_type = #tpu.core_type<tc>, window_params = [{transform_indices = @transform_0, window_bounds = array<i64: 128, 128>}, {pipeline_mode = #tpu.pipeline_mode<synchronous>, transform_indices = @transform_1, window_bounds = array<i64: 8, 128>}, {transform_indices = @transform_2, window_bounds = array<i64: 128, 128>}]} {
    %c0 = arith.constant 0 : index
    %c0_0 = arith.constant 0 : index
    %0 = vector.load %arg1[%c0, %c0_0] : memref<128x128xf32, #tpu.memory_space<vmem>>, vector<128x128xf32>
    %c0_1 = arith.constant 0 : index
    %c0_2 = arith.constant 0 : index
    %1 = vector.load %arg2[%c0_1, %c0_2] : memref<8x128xf32, #tpu.memory_space<vmem>>, vector<8x128xf32>
    %2 = vector.extract_strided_slice %1 {offsets = [0, 0], sizes = [1, 128], strides = [1, 1]} : vector<8x128xf32> to vector<1x128xf32>
    %3 = vector.broadcast %2 : vector<1x128xf32> to vector<128x128xf32>
    %4 = arith.mulf %0, %3 : vector<128x128xf32>
    %c1_i32 = arith.constant 1 : i32
    %5 = tpu.dynamic_rotate %0 by %c1_i32 dim 1 : vector<128x128xf32>, i32 -> vector<128x128xf32>
    %6 = vector.extract_strided_slice %1 {offsets = [1, 0], sizes = [1, 128], strides = [1, 1]} : vector<8x128xf32> to vector<1x128xf32>
    %7 = vector.broadcast %6 : vector<1x128xf32> to vector<128x128xf32>
    %8 = arith.mulf %5, %7 : vector<128x128xf32>
    %9 = arith.addf %4, %8 : vector<128x128xf32>
    %c127_i32 = arith.constant 127 : i32
    %10 = tpu.dynamic_rotate %0 by %c127_i32 dim 1 : vector<128x128xf32>, i32 -> vector<128x128xf32>
    %11 = vector.extract_strided_slice %1 {offsets = [2, 0], sizes = [1, 128], strides = [1, 1]} : vector<8x128xf32> to vector<1x128xf32>
    %12 = vector.broadcast %11 : vector<1x128xf32> to vector<128x128xf32>
    %13 = arith.mulf %10, %12 : vector<128x128xf32>
    %14 = arith.addf %9, %13 : vector<128x128xf32>
    %c2_i32 = arith.constant 2 : i32
    %15 = tpu.dynamic_rotate %0 by %c2_i32 dim 1 : vector<128x128xf32>, i32 -> vector<128x128xf32>
    %16 = vector.extract_strided_slice %1 {offsets = [3, 0], sizes = [1, 128], strides = [1, 1]} : vector<8x128xf32> to vector<1x128xf32>
    %17 = vector.broadcast %16 : vector<1x128xf32> to vector<128x128xf32>
    %18 = arith.mulf %15, %17 : vector<128x128xf32>
    %19 = arith.addf %14, %18 : vector<128x128xf32>
    %c126_i32 = arith.constant 126 : i32
    %20 = tpu.dynamic_rotate %0 by %c126_i32 dim 1 : vector<128x128xf32>, i32 -> vector<128x128xf32>
    %21 = vector.extract_strided_slice %1 {offsets = [4, 0], sizes = [1, 128], strides = [1, 1]} : vector<8x128xf32> to vector<1x128xf32>
    %22 = vector.broadcast %21 : vector<1x128xf32> to vector<128x128xf32>
    %23 = arith.mulf %20, %22 : vector<128x128xf32>
    %24 = arith.addf %19, %23 : vector<128x128xf32>
    %c3_i32 = arith.constant 3 : i32
    %25 = tpu.dynamic_rotate %0 by %c3_i32 dim 1 : vector<128x128xf32>, i32 -> vector<128x128xf32>
    %26 = vector.extract_strided_slice %1 {offsets = [5, 0], sizes = [1, 128], strides = [1, 1]} : vector<8x128xf32> to vector<1x128xf32>
    %27 = vector.broadcast %26 : vector<1x128xf32> to vector<128x128xf32>
    %28 = arith.mulf %25, %27 : vector<128x128xf32>
    %29 = arith.addf %24, %28 : vector<128x128xf32>
    %c125_i32 = arith.constant 125 : i32
    %30 = tpu.dynamic_rotate %0 by %c125_i32 dim 1 : vector<128x128xf32>, i32 -> vector<128x128xf32>
    %31 = vector.extract_strided_slice %1 {offsets = [6, 0], sizes = [1, 128], strides = [1, 1]} : vector<8x128xf32> to vector<1x128xf32>
    %32 = vector.broadcast %31 : vector<1x128xf32> to vector<128x128xf32>
    %33 = arith.mulf %30, %32 : vector<128x128xf32>
    %34 = arith.addf %29, %33 : vector<128x128xf32>
    %c0_3 = arith.constant 0 : index
    %c0_4 = arith.constant 0 : index
    %35 = vector.load %arg3[%c0_3, %c0_4] : memref<128x128xf32, #tpu.memory_space<vmem>>, vector<128x128xf32>
    tpu.vector_store %arg3[%c0_3, %c0_4], %34 {strides = array<i32>} : memref<128x128xf32, #tpu.memory_space<vmem>>, vector<128x128xf32>,
    return
  }
  func.func @transform_0(%arg0: i32) -> (i32, i32) {
    %c0_i32 = arith.constant 0 : i32
    %c0_i32_0 = arith.constant 0 : i32
    return %arg0, %c0_i32 : i32, i32
  }
  func.func @transform_1(%arg0: i32) -> (i32, i32) {
    %c0_i32 = arith.constant 0 : i32
    %c0_i32_0 = arith.constant 0 : i32
    %c0_i32_1 = arith.constant 0 : i32
    return %c0_i32, %c0_i32_0 : i32, i32
  }
  func.func @transform_2(%arg0: i32) -> (i32, i32) {
    %c0_i32 = arith.constant 0 : i32
    %c0_i32_0 = arith.constant 0 : i32
    return %arg0, %c0_i32 : i32, i32
  }
}

</mosaic_0001>

<bundles_post_ra>
// kernel: forward.1
= control target key start
LH: loop header
LB: loop body
LE: loop exit
PB: predicated region body
PF: predicated region fallthrough
CT: control target
= control target key end

     0   :  { %s461_s15 = smov 1   ;;  %s462_s14 = smov 127   ;;  %s1023_s0 = inlined_call_operand.vmem [shape: f32[128,128], index: 0, kind: input, shape index: {}]   ;;  %s1024_s1 = inlined_call_operand.vmem [shape: f32[8,128], index: 1, kind: input, shape index: {}]   ;;  %s1025_s2 = inlined_call_operand.vmem [shape: f32[128,128], index: 2, kind: output, shape index: {}]  }
   0x1   :  { %v485_v0 = vld [vmem:[%s1023_s0 + $0x20] sm:$0xff]  ;;  %v490_v1 = vld [vmem:[%s1023_s0 + $0x10] sm:$0xff]  ;;  %v506_v3 = vld [vmem:[%s1023_s0 + $0x28] sm:$0xff]  ;;  %s465_s17 = smov 3   ;;  %s466_s18 = smov 125  }
   0x2   :  { %v495_v2 = vld [vmem:[%s1023_s0] sm:$0xff]  ;;  %53 = vrot.lane.b32.xlu2 %v485_v0, %s461_s15  ;;  %49 = vrot.lane.b32.xlu1 %v490_v1, %s461_s15  ;;  %v511_v4 = vld [vmem:[%s1023_s0 + $0x18] sm:$0xff] }
   0x3   :  { %45 = vrot.lane.b32.xlu0 %v495_v2, %s461_s15  ;;  %v516_v5 = vld [vmem:[%s1023_s0 + $0x8] sm:$0xff]  ;;  %v527_v6 = vld [vmem:[%s1023_s0 + $0x40] sm:$0xff]  ;;  %v532_v7 = vld [vmem:[%s1023_s0 + $0x38] sm:$0xff] }
   0x4   :  { %v537_v8 = vld [vmem:[%s1023_s0 + $0x30] sm:$0xff]  ;;  %v548_v9 = vld [vmem:[%s1023_s0 + $0x58] sm:$0xff]  ;;  %v558_v11 = vld [vmem:[%s1023_s0 + $0x48] sm:$0xff] }
   0x5   :  { %v553_v10 = vld [vmem:[%s1023_s0 + $0x50] sm:$0xff]  ;;  %v574_v13 = vld [vmem:[%s1023_s0 + $0x68] sm:$0xff]  ;;  %v579_v14 = vld [vmem:[%s1023_s0 + $0x60] sm:$0xff] }
   0x6   :  { %v569_v12 = vld [vmem:[%s1023_s0 + $0x70] sm:$0xff]  ;;  %v590_v15 = vld [vmem:[%s1023_s0 + $0x78] sm:$0xff]  ;;  %s463_s0 = smov 2   ;;  %v634_v22 = vld [vmem:[%s1024_s1] sm:$0xff]  ;;  %s464_s1 = smov 126  }
   0x7   :  { %v637_v23 = vperm.slane %v634_v22, 0  ;;  %v642_v24 = vperm.slane %v634_v22, 1  ;;  %v654_v33 = vperm.slane %v634_v22, 2 }
   0x9   :  { %v43_v25 = vmul.f32 %v637_v23, %v569_v12  ;;  %v30_v31 = vmul.f32 %v637_v23, %v516_v5  ;;  %v33_v40 = vmul.f32 %v637_v23, %v485_v0  ;;  %v36_v48 = vmul.f32 %v637_v23, %v532_v7 }
   0xa   :  { %55 = vrot.lane.b32.xlu2 %v506_v3, %s461_s15  ;;  %51 = vrot.lane.b32.xlu1 %v511_v4, %s461_s15  ;;  %v42_v50 = vmul.f32 %v637_v23, %v574_v13  ;;  %v29_v59 = vmul.f32 %v637_v23, %v495_v2  ;;  %v39_v61 = vmul.f32 %v637_v23, %v553_v10 }
   0xb   :  { %47 = vrot.lane.b32.xlu0 %v516_v5, %s461_s15 }
  0x12   :  { %61 = vrot.lane.b32.xlu2 %v527_v6, %s461_s15  ;;  %59 = vrot.lane.b32.xlu1 %v532_v7, %s461_s15 }
  0x13   :  { %57 = vrot.lane.b32.xlu0 %v537_v8, %s461_s15 }
  0x1a   :  { %67 = vrot.lane.b32.xlu2 %v548_v9, %s461_s15  ;;  %65 = vrot.lane.b32.xlu1 %v553_v10, %s461_s15 }
  0x1b   :  { %63 = vrot.lane.b32.xlu0 %v558_v11, %s461_s15 }
  0x22   :  { %73 = vrot.lane.b32.xlu2 %v569_v12, %s461_s15  ;;  %71 = vrot.lane.b32.xlu1 %v574_v13, %s461_s15 }
  0x23   :  { %69 = vrot.lane.b32.xlu0 %v579_v14, %s461_s15 }
  0x2a   :  { %112 = vrot.lane.b32.xlu2 %v516_v5, %s462_s14  ;;  %110 = vrot.lane.b32.xlu1 %v495_v2, %s462_s14 }
  0x2b   :  { %75 = vrot.lane.b32.xlu0 %v590_v15, %s461_s15 }
  0x32   :  { %118 = vrot.lane.b32.xlu2 %v485_v0, %s462_s14  ;;  %116 = vrot.lane.b32.xlu1 %v511_v4, %s462_s14 }
  0x33   :  { %114 = vrot.lane.b32.xlu0 %v490_v1, %s462_s14 }
  0x3a   :  { %124 = vrot.lane.b32.xlu2 %v532_v7, %s462_s14  ;;  %122 = vrot.lane.b32.xlu1 %v537_v8, %s462_s14 }
  0x3b   :  { %120 = vrot.lane.b32.xlu0 %v506_v3, %s462_s14 }
  0x42   :  { %130 = vrot.lane.b32.xlu2 %v553_v10, %s462_s14  ;;  %128 = vrot.lane.b32.xlu1 %v558_v11, %s462_s14 }
  0x43   :  { %126 = vrot.lane.b32.xlu0 %v527_v6, %s462_s14 }
  0x4a   :  { %136 = vrot.lane.b32.xlu2 %v574_v13, %s462_s14  ;;  %134 = vrot.lane.b32.xlu1 %v579_v14, %s462_s14 }
  0x4b   :  { %132 = vrot.lane.b32.xlu0 %v548_v9, %s462_s14 }
  0x52   :  { %175 = vrot.lane.b32.xlu2 %v495_v2, %s463_s0  ;;  %140 = vrot.lane.b32.xlu1 %v590_v15, %s462_s14 }
  0x53   :  { %138 = vrot.lane.b32.xlu0 %v569_v12, %s462_s14 }
  0x5a   :  { %181 = vrot.lane.b32.xlu2 %v511_v4, %s463_s0  ;;  %179 = vrot.lane.b32.xlu1 %v490_v1, %s463_s0 }
  0x5b   :  { %177 = vrot.lane.b32.xlu0 %v516_v5, %s463_s0 }
  0x5c   :  { %v54_v16 = vpop.permute.xlu2 %53 }
  0x5d   :  { %v82_v41 = vmul.f32 %v642_v24, %v54_v16 }
  0x5f   :  { %v98_v44 = vadd.f32 %v82_v41, %v33_v40 }
  0x62   :  { %187 = vrot.lane.b32.xlu2 %v537_v8, %s463_s0  ;;  %185 = vrot.lane.b32.xlu1 %v506_v3, %s463_s0 }
  0x63   :  { %183 = vrot.lane.b32.xlu0 %v485_v0, %s463_s0 }
  0x64   :  { %v617_v17 = vpop.permute.xlu2 %55 }
  0x6a   :  { %193 = vrot.lane.b32.xlu2 %v558_v11, %s463_s0  ;;  %191 = vrot.lane.b32.xlu1 %v527_v6, %s463_s0 }
  0x6b   :  { %189 = vrot.lane.b32.xlu0 %v532_v7, %s463_s0 }
  0x6c   :  { %v622_v18 = vpop.permute.xlu2 %61 }
  0x72   :  { %199 = vrot.lane.b32.xlu2 %v579_v14, %s463_s0  ;;  %197 = vrot.lane.b32.xlu1 %v548_v9, %s463_s0 }
  0x73   :  { %195 = vrot.lane.b32.xlu0 %v553_v10, %s463_s0 }
  0x74   :  { %v627_v19 = vpop.permute.xlu2 %67  ;;  %v629_v20 = vpop.permute.xlu1 %49 }
  0x75   :  { %v46_v21 = vpop.permute.xlu0 %45 }
  0x76   :  { %v78_v60 = vmul.f32 %v642_v24, %v46_v21 }
  0x7a   :  { %205 = vrot.lane.b32.xlu2 %v590_v15, %s463_s0  ;;  %203 = vrot.lane.b32.xlu1 %v569_v12, %s463_s0 }
  0x7b   :  { %201 = vrot.lane.b32.xlu0 %v574_v13, %s463_s0 }
  0x7c   :  { %v74_v26 = vpop.permute.xlu2 %73  ;;  %v52_v27 = vpop.permute.xlu1 %51 }
  0x7d   :  { %v92_v28 = vmul.f32 %v642_v24, %v74_v26  ;;  %v48_v29 = vpop.permute.xlu0 %47 }
  0x7e   :  { %v79_v32 = vmul.f32 %v642_v24, %v48_v29 }
  0x7f   :  { %v648_v30 = vadd.f32 %v92_v28, %v43_v25  ;;  %v94_v25 = vadd.f32 %v78_v60, %v29_v59 }
  0x80   :  { %v95_v36 = vadd.f32 %v79_v32, %v30_v31 }
  0x82   :  { %244 = vrot.lane.b32.xlu2 %v490_v1, %s464_s1  ;;  %242 = vrot.lane.b32.xlu1 %v516_v5, %s464_s1 }
  0x83   :  { %240 = vrot.lane.b32.xlu0 %v495_v2, %s464_s1 }
  0x84   :  { %v60_v34 = vpop.permute.xlu1 %59  ;;  %v113_v35 = vpop.permute.xlu2 %112 }
  0x85   :  { %v144_v37 = vmul.f32 %v654_v33, %v113_v35  ;;  %v58_v38 = vpop.permute.xlu0 %57  ;;  %v85_v49 = vmul.f32 %v642_v24, %v60_v34  ;;  %v32_v34 = vmul.f32 %v637_v23, %v511_v4  ;;  %v81_v35 = vmul.f32 %v642_v24, %v52_v27 }
  0x87   :  { %v663_v39 = vadd.f32 %v144_v37, %v95_v36  ;;  %v101_v53 = vadd.f32 %v85_v49, %v36_v48  ;;  %v31_v36 = vmul.f32 %v637_v23, %v490_v1  ;;  %v80_v37 = vmul.f32 %v642_v24, %v629_v20 }
  0x8a   :  { %250 = vrot.lane.b32.xlu2 %v506_v3, %s464_s1  ;;  %248 = vrot.lane.b32.xlu1 %v485_v0, %s464_s1 }
  0x8b   :  { %246 = vrot.lane.b32.xlu0 %v511_v4, %s464_s1 }
  0x8c   :  { %v66_v42 = vpop.permute.xlu1 %65  ;;  %v119_v43 = vpop.permute.xlu2 %118 }
  0x8d   :  { %v147_v45 = vmul.f32 %v654_v33, %v119_v43  ;;  %v675_v46 = vpop.permute.xlu0 %63  ;;  %v88_v62 = vmul.f32 %v642_v24, %v66_v42  ;;  %v97_v42 = vadd.f32 %v81_v35, %v32_v34  ;;  %v37_v34 = vmul.f32 %v637_v23, %v527_v6 }
  0x8e   :  { %v86_v35 = vmul.f32 %v642_v24, %v622_v18 }
  0x8f   :  { %v677_v47 = vadd.f32 %v147_v45, %v98_v44  ;;  %v104_v26 = vadd.f32 %v88_v62, %v39_v61  ;;  %v96_v45 = vadd.f32 %v80_v37, %v31_v36 }
  0x92   :  { %256 = vrot.lane.b32.xlu2 %v527_v6, %s464_s1  ;;  %254 = vrot.lane.b32.xlu1 %v532_v7, %s464_s1 }
  0x93   :  { %252 = vrot.lane.b32.xlu0 %v537_v8, %s464_s1 }
  0x94   :  { %v72_v51 = vpop.permute.xlu1 %71  ;;  %v125_v52 = vpop.permute.xlu2 %124 }
  0x95   :  { %v91_v54 = vmul.f32 %v642_v24, %v72_v51  ;;  %v150_v55 = vmul.f32 %v654_v33, %v125_v52  ;;  %v692_v56 = vpop.permute.xlu0 %69  ;;  %v35_v51 = vmul.f32 %v637_v23, %v537_v8  ;;  %v84_v52 = vmul.f32 %v642_v24, %v58_v38 }
  0x97   :  { %v107_v57 = vadd.f32 %v91_v54, %v42_v50  ;;  %v694_v58 = vadd.f32 %v150_v55, %v101_v53  ;;  %v738_v53 = vperm.slane %v634_v22, 3  ;;  %v34_v54 = vmul.f32 %v637_v23, %v506_v3 }
  0x98   :  { %v83_v55 = vmul.f32 %v642_v24, %v617_v17  ;;  %v100_v59 = vadd.f32 %v84_v52, %v35_v51  ;;  %v40_v51 = vmul.f32 %v637_v23, %v548_v9  ;;  %v89_v52 = vmul.f32 %v642_v24, %v627_v19 }
  0x9a   :  { %262 = vrot.lane.b32.xlu2 %v548_v9, %s464_s1  ;;  %260 = vrot.lane.b32.xlu1 %v553_v10, %s464_s1 }
  0x9b   :  { %258 = vrot.lane.b32.xlu0 %v558_v11, %s464_s1 }
  0x9c   :  { %v131_v63 = vpop.permute.xlu2 %130  ;;  %v111_v16 = vpop.permute.xlu1 %110 }
  0x9d   :  { %v153_v21 = vmul.f32 %v654_v33, %v131_v63  ;;  %v143_v28 = vmul.f32 %v654_v33, %v111_v16  ;;  %v710_v29 = vpop.permute.xlu0 %75  ;;  %v99_v63 = vadd.f32 %v83_v55, %v34_v54 }
  0x9f   :  { %v712_v31 = vadd.f32 %v153_v21, %v104_v26  ;;  %v159_v32 = vadd.f32 %v143_v28, %v94_v25  ;;  %v38_v21 = vmul.f32 %v637_v23, %v558_v11  ;;  %v87_v28 = vmul.f32 %v642_v24, %v675_v46 }
  0xa1   :  { %v103_v37 = vadd.f32 %v87_v28, %v38_v21 }
  0xa2   :  { %268 = vrot.lane.b32.xlu2 %v569_v12, %s464_s1  ;;  %266 = vrot.lane.b32.xlu1 %v574_v13, %s464_s1 }
  0xa3   :  { %264 = vrot.lane.b32.xlu0 %v579_v14, %s464_s1 }
  0xa4   :  { %v137_v40 = vpop.permute.xlu2 %136  ;;  %v117_v41 = vpop.permute.xlu1 %116 }
  0xa5   :  { %v156_v27 = vmul.f32 %v654_v33, %v137_v40  ;;  %v146_v43 = vmul.f32 %v654_v33, %v117_v41  ;;  %v115_v44 = vpop.permute.xlu0 %114 }
  0xa6   :  { %v145_v20 = vmul.f32 %v654_v33, %v115_v44 }
  0xa7   :  { %v730_v48 = vadd.f32 %v156_v27, %v107_v57  ;;  %v162_v49 = vadd.f32 %v146_v43, %v97_v42  ;;  %v102_v42 = vadd.f32 %v86_v35, %v37_v34 }
  0xa8   :  { %v732_v50 = vadd.f32 %v145_v20, %v96_v45  ;;  %v41_v45 = vmul.f32 %v637_v23, %v579_v14  ;;  %v90_v20 = vmul.f32 %v642_v24, %v692_v56 }
  0xaa   :  { %307 = vrot.lane.b32.xlu2 %v516_v5, %s465_s17  ;;  %305 = vrot.lane.b32.xlu1 %v495_v2, %s465_s17  ;;  %v106_v55 = vadd.f32 %v90_v20, %v41_v45 }
  0xab   :  { %270 = vrot.lane.b32.xlu0 %v590_v15, %s464_s1 }
  0xac   :  { %v176_v38 = vpop.permute.xlu2 %175  ;;  %v123_v57 = vpop.permute.xlu1 %122 }
  0xad   :  { %v208_v60 = vmul.f32 %v738_v53, %v176_v38  ;;  %v149_v61 = vmul.f32 %v654_v33, %v123_v57  ;;  %v121_v62 = vpop.permute.xlu0 %120 }
  0xae   :  { %v148_v17 = vmul.f32 %v654_v33, %v121_v62 }
  0xaf   :  { %v753_v16 = vadd.f32 %v208_v60, %v159_v32  ;;  %v165_v25 = vadd.f32 %v149_v61, %v100_v59  ;;  %v105_v59 = vadd.f32 %v89_v52, %v40_v51 }
  0xb0   :  { %v755_v26 = vadd.f32 %v148_v17, %v99_v63  ;;  %v44_v63 = vmul.f32 %v637_v23, %v590_v15  ;;  %v93_v17 = vmul.f32 %v642_v24, %v710_v29 }
  0xb2   :  { %313 = vrot.lane.b32.xlu2 %v485_v0, %s465_s17  ;;  %311 = vrot.lane.b32.xlu1 %v511_v4, %s465_s17  ;;  %v109_v28 = vadd.f32 %v93_v17, %v44_v63 }
  0xb3   :  { %309 = vrot.lane.b32.xlu0 %v490_v1, %s465_s17 }
  0xb4   :  { %v182_v32 = vpop.permute.xlu2 %181  ;;  %v129_v36 = vpop.permute.xlu1 %128 }
  0xb5   :  { %v211_v46 = vmul.f32 %v738_v53, %v182_v32  ;;  %v152_v40 = vmul.f32 %v654_v33, %v129_v36  ;;  %v127_v41 = vpop.permute.xlu0 %126 }
  0xb6   :  { %v151_v18 = vmul.f32 %v654_v33, %v127_v41 }
  0xb7   :  { %v774_v27 = vadd.f32 %v211_v46, %v162_v49  ;;  %v168_v43 = vadd.f32 %v152_v40, %v103_v37 }
  0xb8   :  { %v776_v44 = vadd.f32 %v151_v18, %v102_v42 }
  0xba   :  { %319 = vrot.lane.b32.xlu2 %v532_v7, %s465_s17  ;;  %317 = vrot.lane.b32.xlu1 %v537_v8, %s465_s17 }
  0xbb   :  { %315 = vrot.lane.b32.xlu0 %v506_v3, %s465_s17 }
  0xbc   :  { %v188_v49 = vpop.permute.xlu2 %187  ;;  %v135_v54 = vpop.permute.xlu1 %134 }
  0xbd   :  { %v214_v56 = vmul.f32 %v738_v53, %v188_v49  ;;  %v155_v38 = vmul.f32 %v654_v33, %v135_v54  ;;  %v133_v57 = vpop.permute.xlu0 %132 }
  0xbe   :  { %v154_v19 = vmul.f32 %v654_v33, %v133_v57 }
  0xbf   :  { %v795_v60 = vadd.f32 %v214_v56, %v165_v25  ;;  %v171_v61 = vadd.f32 %v155_v38, %v106_v55  ;;  %v842_v55 = vperm.slane %v634_v22, 4 }
  0xc0   :  { %v797_v62 = vadd.f32 %v154_v19, %v105_v59 }
  0xc2   :  { %325 = vrot.lane.b32.xlu2 %v553_v10, %s465_s17  ;;  %323 = vrot.lane.b32.xlu1 %v558_v11, %s465_s17 }
  0xc3   :  { %321 = vrot.lane.b32.xlu0 %v527_v6, %s465_s17 }
  0xc4   :  { %v194_v25 = vpop.permute.xlu2 %193  ;;  %v141_v21 = vpop.permute.xlu1 %140 }
  0xc5   :  { %v217_v34 = vmul.f32 %v738_v53, %v194_v25  ;;  %v158_v35 = vmul.f32 %v654_v33, %v141_v21  ;;  %v139_v23 = vpop.permute.xlu0 %138 }
  0xc6   :  { %v157_v32 = vmul.f32 %v654_v33, %v139_v23 }
  0xc7   :  { %v812_v24 = vadd.f32 %v217_v34, %v168_v43  ;;  %v174_v29 = vadd.f32 %v158_v35, %v109_v28 }
  0xc8   :  { %v173_v36 = vadd.f32 %v157_v32, %v648_v30 }
  0xca   :  { %331 = vrot.lane.b32.xlu2 %v574_v13, %s465_s17  ;;  %329 = vrot.lane.b32.xlu1 %v579_v14, %s465_s17 }
  0xcb   :  { %327 = vrot.lane.b32.xlu0 %v548_v9, %s465_s17 }
  0xcc   :  { %v200_v37 = vpop.permute.xlu2 %199  ;;  %v180_v46 = vpop.permute.xlu1 %179 }
  0xcd   :  { %v220_v40 = vmul.f32 %v738_v53, %v200_v37  ;;  %v210_v33 = vmul.f32 %v738_v53, %v180_v46  ;;  %v178_v41 = vpop.permute.xlu0 %177 }
  0xce   :  { %v209_v42 = vmul.f32 %v738_v53, %v178_v41  ;;  %v903_v41 = vperm.slane %v634_v22, 5 }
  0xcf   :  { %v824_v18 = vadd.f32 %v220_v40, %v171_v61  ;;  %v226_v30 = vadd.f32 %v210_v33, %v732_v50 }
  0xd0   :  { %v225_v43 = vadd.f32 %v209_v42, %v663_v39 }
  0xd2   :  { %370 = vrot.lane.b32.xlu2 %v495_v2, %s466_s18  ;;  %335 = vrot.lane.b32.xlu1 %v590_v15, %s465_s17 }
  0xd3   :  { %333 = vrot.lane.b32.xlu0 %v569_v12, %s465_s17 }
  0xd4   :  { %v206_v45 = vpop.permute.xlu2 %205  ;;  %v186_v20 = vpop.permute.xlu1 %185 }
  0xd5   :  { %v223_v51 = vmul.f32 %v738_v53, %v206_v45  ;;  %v213_v52 = vmul.f32 %v738_v53, %v186_v20  ;;  %v184_v49 = vpop.permute.xlu0 %183 }
  0xd6   :  { %v212_v50 = vmul.f32 %v738_v53, %v184_v49 }
  0xd7   :  { %v837_v39 = vadd.f32 %v223_v51, %v174_v29  ;;  %v229_v54 = vadd.f32 %v213_v52, %v755_v26 }
  0xd8   :  { %v228_v2 = vadd.f32 %v212_v50, %v677_v47 }
  0xda   :  { %376 = vrot.lane.b32.xlu2 %v511_v4, %s466_s18  ;;  %374 = vrot.lane.b32.xlu1 %v490_v1, %s466_s18 }
  0xdb   :  { %372 = vrot.lane.b32.xlu0 %v516_v5, %s466_s18 }
  0xdc   :  { %v245_v56 = vpop.permute.xlu2 %244  ;;  %v192_v38 = vpop.permute.xlu1 %191 }
  0xdd   :  { %v275_v57 = vmul.f32 %v842_v55, %v245_v56  ;;  %v216_v26 = vmul.f32 %v738_v53, %v192_v38  ;;  %v190_v59 = vpop.permute.xlu0 %189 }
  0xde   :  { %v215_v47 = vmul.f32 %v738_v53, %v190_v59 }
  0xdf   :  { %v853_v19 = vadd.f32 %v275_v57, %v226_v30  ;;  %v232_v61 = vadd.f32 %v216_v26, %v776_v44 }
  0xe0   :  { %v231_v4 = vadd.f32 %v215_v47, %v694_v58 }
  0xe2   :  { %382 = vrot.lane.b32.xlu2 %v537_v8, %s466_s18  ;;  %380 = vrot.lane.b32.xlu1 %v506_v3, %s466_s18 }
  0xe3   :  { %378 = vrot.lane.b32.xlu0 %v485_v0, %s466_s18 }
  0xe4   :  { %v251_v1 = vpop.permute.xlu2 %250  ;;  %v198_v5 = vpop.permute.xlu1 %197 }
  0xe5   :  { %v278_v63 = vmul.f32 %v842_v55, %v251_v1  ;;  %v219_v17 = vmul.f32 %v738_v53, %v198_v5  ;;  %v196_v25 = vpop.permute.xlu0 %195 }
  0xe6   :  { %v218_v44 = vmul.f32 %v738_v53, %v196_v25 }
  0xe7   :  { %v866_v21 = vadd.f32 %v278_v63, %v229_v54  ;;  %v235_v58 = vadd.f32 %v219_v17, %v797_v62 }
  0xe8   :  { %v234_v8 = vadd.f32 %v218_v44, %v712_v31 }
  0xea   :  { %388 = vrot.lane.b32.xlu2 %v558_v11, %s466_s18  ;;  %386 = vrot.lane.b32.xlu1 %v527_v6, %s466_s18 }
  0xeb   :  { %384 = vrot.lane.b32.xlu0 %v532_v7, %s466_s18 }
  0xec   :  { %v257_v0 = vpop.permute.xlu2 %256  ;;  %v204_v3 = vpop.permute.xlu1 %203 }
  0xed   :  { %v281_v28 = vmul.f32 %v842_v55, %v257_v0  ;;  %v222_v34 = vmul.f32 %v738_v53, %v204_v3  ;;  %v202_v35 = vpop.permute.xlu0 %201 }
  0xee   :  { %v221_v62 = vmul.f32 %v738_v53, %v202_v35 }
  0xef   :  { %v879_v23 = vadd.f32 %v281_v28, %v232_v61  ;;  %v238_v31 = vadd.f32 %v222_v34, %v173_v36  ;;  %v926_v34 = vperm.slane %v634_v22, 6 }
  0xf0   :  { %v237_v11 = vadd.f32 %v221_v62, %v730_v48 }
  0xf2   :  { %394 = vrot.lane.b32.xlu2 %v579_v14, %s466_s18  ;;  %392 = vrot.lane.b32.xlu1 %v548_v9, %s466_s18 }
  0xf3   :  { %390 = vrot.lane.b32.xlu0 %v553_v10, %s466_s18 }
  0xf4   :  { %v263_v6 = vpop.permute.xlu2 %262  ;;  %v243_v7 = vpop.permute.xlu1 %242 }
  0xf5   :  { %v284_v32 = vmul.f32 %v842_v55, %v263_v6  ;;  %v274_v53 = vmul.f32 %v842_v55, %v243_v7  ;;  %v241_v29 = vpop.permute.xlu0 %240 }
  0xf6   :  { %v273_v0 = vmul.f32 %v842_v55, %v241_v29 }
  0xf7   :  { %v890_v37 = vadd.f32 %v284_v32, %v235_v58  ;;  %v290_v36 = vadd.f32 %v274_v53, %v225_v43 }
  0xf8   :  { %v289_v35 = vadd.f32 %v273_v0, %v753_v16 }
  0xfa   :  { %400 = vrot.lane.b32.xlu2 %v590_v15, %s466_s18  ;;  %398 = vrot.lane.b32.xlu1 %v569_v12, %s466_s18 }
  0xfb   :  { %396 = vrot.lane.b32.xlu0 %v574_v13, %s466_s18 }
  0xfc   :  { %v269_v9 = vpop.permute.xlu2 %268  ;;  %v249_v10 = vpop.permute.xlu1 %248 }
  0xfd   :  { %v287_v14 = vmul.f32 %v842_v55, %v269_v9  ;;  %v277_v48 = vmul.f32 %v842_v55, %v249_v10  ;;  %v247_v46 = vpop.permute.xlu0 %246 }
  0xfe   :  { %v276_v32 = vmul.f32 %v842_v55, %v247_v46 }
  0xff   :  { %v900_v40 = vadd.f32 %v287_v14, %v238_v31  ;;  %v293_v33 = vadd.f32 %v277_v48, %v228_v2 }
 0x100   :  { %v292_v22 = vadd.f32 %v276_v32, %v774_v27 }
 0x104   :  { %v308_v15 = vpop.permute.xlu2 %307  ;;  %v255_v42 = vpop.permute.xlu1 %254 }
 0x105   :  { %v339_v12 = vmul.f32 %v903_v41, %v308_v15  ;;  %v280_v30 = vmul.f32 %v842_v55, %v255_v42  ;;  %v253_v13 = vpop.permute.xlu0 %252 }
 0x106   :  { %v279_v48 = vmul.f32 %v842_v55, %v253_v13 }
 0x107   :  { %v907_v43 = vadd.f32 %v339_v12, %v290_v36  ;;  %v296_v45 = vadd.f32 %v280_v30, %v231_v4 }
 0x108   :  { %v295_v15 = vadd.f32 %v279_v48, %v795_v60 }
 0x10c   :  { %v314_v20 = vpop.permute.xlu2 %313  ;;  %v261_v51 = vpop.permute.xlu1 %260 }
 0x10d   :  { %v342_v52 = vmul.f32 %v903_v41, %v314_v20  ;;  %v283_v49 = vmul.f32 %v842_v55, %v261_v51  ;;  %v259_v50 = vpop.permute.xlu0 %258 }
 0x10e   :  { %v282_v20 = vmul.f32 %v842_v55, %v259_v50 }
 0x10f   :  { %v911_v54 = vadd.f32 %v342_v52, %v293_v33  ;;  %v299_v2 = vadd.f32 %v283_v49, %v234_v8 }
 0x110   :  { %v298_v52 = vadd.f32 %v282_v20, %v812_v24 }
 0x114   :  { %v320_v56 = vpop.permute.xlu2 %319  ;;  %v267_v38 = vpop.permute.xlu1 %266 }
 0x115   :  { %v345_v57 = vmul.f32 %v903_v41, %v320_v56  ;;  %v286_v26 = vmul.f32 %v842_v55, %v267_v38  ;;  %v265_v59 = vpop.permute.xlu0 %264 }
 0x117   :  { %v915_v47 = vadd.f32 %v345_v57, %v296_v45  ;;  %v302_v61 = vadd.f32 %v286_v26, %v237_v11  ;;  %v285_v57 = vmul.f32 %v842_v55, %v265_v59 }
 0x11c   :  { %v326_v4 = vpop.permute.xlu2 %325  ;;  %v306_v1 = vpop.permute.xlu1 %305 }
 0x11d   :  { %v348_v5 = vmul.f32 %v903_v41, %v326_v4  ;;  %v271_v63 = vpop.permute.xlu0 %270  ;;  %v338_v28 = vmul.f32 %v903_v41, %v306_v1  ;;  %v301_v4 = vadd.f32 %v285_v57, %v824_v18 }
 0x11e   :  { %v288_v0 = vmul.f32 %v842_v55, %v271_v63 }
 0x11f   :  { %v918_v17 = vadd.f32 %v348_v5, %v299_v2  ;;  %v354_v11 = vadd.f32 %v338_v28, %v289_v35 }
 0x124   :  { %v332_v25 = vpop.permute.xlu2 %331  ;;  %v312_v44 = vpop.permute.xlu1 %311 }
 0x125   :  { %v351_v58 = vmul.f32 %v903_v41, %v332_v25  ;;  %v310_v8 = vpop.permute.xlu0 %309  ;;  %v341_v29 = vmul.f32 %v903_v41, %v312_v44 }
 0x126   :  { %v340_v50 = vmul.f32 %v903_v41, %v310_v8 }
 0x127   :  { %v922_v3 = vadd.f32 %v351_v58, %v302_v61  ;;  %v357_v16 = vadd.f32 %v341_v29, %v292_v22 }
 0x128   :  { %v356_v5 = vadd.f32 %v340_v50, %v853_v19  ;;  %v304_v19 = vadd.f32 %v288_v0, %v837_v39 }
 0x12c   :  { %v371_v62 = vpop.permute.xlu2 %370  ;;  %v318_v31 = vpop.permute.xlu1 %317 }
 0x12d   :  { %v403_v6 = vmul.f32 %v926_v34, %v371_v62  ;;  %v316_v7 = vpop.permute.xlu0 %315  ;;  %v344_v46 = vmul.f32 %v903_v41, %v318_v31 }
 0x12e   :  { %v343_v18 = vmul.f32 %v903_v41, %v316_v7 }
 0x12f   :  { %v419_v53 = vadd.f32 %v403_v6, %v354_v11  ;;  %v360_v27 = vadd.f32 %v344_v46, %v295_v15 }
 0x130   :  { %v359_v63 = vadd.f32 %v343_v18, %v866_v21 }
 0x131   :  { %435 = vst [vmem:[%s1025_s2] sm:$0xff] %v419_v53 }
 0x134   :  { %v377_v36 = vpop.permute.xlu2 %376  ;;  %v324_v9 = vpop.permute.xlu1 %323 }
 0x135   :  { %v406_v10 = vmul.f32 %v926_v34, %v377_v36  ;;  %v322_v14 = vpop.permute.xlu0 %321  ;;  %v347_v13 = vmul.f32 %v903_v41, %v324_v9 }
 0x136   :  { %v346_v36 = vmul.f32 %v903_v41, %v322_v14 }
 0x137   :  { %v422_v33 = vadd.f32 %v406_v10, %v357_v16  ;;  %v363_v60 = vadd.f32 %v347_v13, %v298_v52 }
 0x138   :  { %v362_v9 = vadd.f32 %v346_v36, %v879_v23 }
 0x139   :  { %438 = vst [vmem:[%s1025_s2 + $0x18] sm:$0xff] %v422_v33 }
 0x13c   :  { %v383_v42 = vpop.permute.xlu2 %382  ;;  %v330_v12 = vpop.permute.xlu1 %329 }
 0x13d   :  { %v409_v30 = vmul.f32 %v926_v34, %v383_v42  ;;  %v328_v45 = vpop.permute.xlu0 %327  ;;  %v350_v61 = vmul.f32 %v903_v41, %v330_v12 }
 0x13e   :  { %v349_v33 = vmul.f32 %v903_v41, %v328_v45 }
 0x13f   :  { %v425_v51 = vadd.f32 %v409_v30, %v360_v27  ;;  %v366_v25 = vadd.f32 %v350_v61, %v301_v4 }
 0x140   :  { %v365_v23 = vadd.f32 %v349_v33, %v890_v37 }
 0x141   :  { %441 = vst [vmem:[%s1025_s2 + $0x30] sm:$0xff] %v425_v51 }
 0x144   :  { %v389_v49 = vpop.permute.xlu2 %388  ;;  %v336_v2 = vpop.permute.xlu1 %335 }
 0x145   :  { %v412_v56 = vmul.f32 %v926_v34, %v389_v49  ;;  %v334_v38 = vpop.permute.xlu0 %333  ;;  %v353_v31 = vmul.f32 %v903_v41, %v336_v2 }
 0x146   :  { %v352_v30 = vmul.f32 %v903_v41, %v334_v38 }
 0x147   :  { %v428_v26 = vadd.f32 %v412_v56, %v363_v60  ;;  %v369_v11 = vadd.f32 %v353_v31, %v304_v19 }
 0x148   :  { %v368_v37 = vadd.f32 %v352_v30, %v900_v40 }
 0x149   :  { %444 = vst [vmem:[%s1025_s2 + $0x48] sm:$0xff] %v428_v26 }
 0x14c   :  { %v395_v24 = vpop.permute.xlu2 %394  ;;  %v375_v1 = vpop.permute.xlu1 %374 }
 0x14d   :  { %v415_v44 = vmul.f32 %v926_v34, %v395_v24  ;;  %v405_v59 = vmul.f32 %v926_v34, %v375_v1  ;;  %v373_v58 = vpop.permute.xlu0 %372 }
 0x14e   :  { %v404_v8 = vmul.f32 %v926_v34, %v373_v58 }
 0x14f   :  { %v431_v28 = vadd.f32 %v415_v44, %v366_v25  ;;  %v421_v35 = vadd.f32 %v405_v59, %v356_v5 }
 0x150   :  { %v420_v62 = vadd.f32 %v404_v8, %v907_v43 }
 0x151   :  { %447 = vst [vmem:[%s1025_s2 + $0x60] sm:$0xff] %v431_v28 }
 0x152   :  { %437 = vst [vmem:[%s1025_s2 + $0x10] sm:$0xff] %v421_v35 }
 0x153   :  { %436 = vst [vmem:[%s1025_s2 + $0x8] sm:$0xff] %v420_v62 }
 0x154   :  { %v401_v55 = vpop.permute.xlu2 %400  ;;  %v381_v43 = vpop.permute.xlu1 %380 }
 0x155   :  { %v418_v6 = vmul.f32 %v926_v34, %v401_v55  ;;  %v408_v7 = vmul.f32 %v926_v34, %v381_v43  ;;  %v379_v32 = vpop.permute.xlu0 %378 }
 0x156   :  { %v407_v53 = vmul.f32 %v926_v34, %v379_v32 }
 0x157   :  { %v434_v29 = vadd.f32 %v418_v6, %v369_v11  ;;  %v424_v22 = vadd.f32 %v408_v7, %v359_v63 }
 0x158   :  { %v423_v39 = vadd.f32 %v407_v53, %v911_v54 }
 0x159   :  { %450 = vst [vmem:[%s1025_s2 + $0x78] sm:$0xff] %v434_v29 }
 0x15a   :  { %440 = vst [vmem:[%s1025_s2 + $0x28] sm:$0xff] %v424_v22 }
 0x15b   :  { %439 = vst [vmem:[%s1025_s2 + $0x20] sm:$0xff] %v423_v39 }
 0x15c   :  { %v387_v21 = vpop.permute.xlu1 %386 }
 0x15d   :  { %v411_v16 = vmul.f32 %v926_v34, %v387_v21  ;;  %v385_v54 = vpop.permute.xlu0 %384 }
 0x15e   :  { %v410_v10 = vmul.f32 %v926_v34, %v385_v54 }
 0x15f   :  { %v427_v14 = vadd.f32 %v411_v16, %v362_v9 }
 0x160   :  { %v426_v48 = vadd.f32 %v410_v10, %v915_v47 }
 0x161   :  { %443 = vst [vmem:[%s1025_s2 + $0x40] sm:$0xff] %v427_v14 }
 0x162   :  { %442 = vst [vmem:[%s1025_s2 + $0x38] sm:$0xff] %v426_v48 }
 0x164   :  { %v393_v46 = vpop.permute.xlu1 %392 }
 0x165   :  { %v414_v15 = vmul.f32 %v926_v34, %v393_v46  ;;  %v391_v42 = vpop.permute.xlu0 %390 }
 0x166   :  { %v413_v12 = vmul.f32 %v926_v34, %v391_v42 }
 0x167   :  { %v430_v27 = vadd.f32 %v414_v15, %v365_v23 }
 0x168   :  { %v429_v47 = vadd.f32 %v413_v12, %v918_v17 }
 0x169   :  { %446 = vst [vmem:[%s1025_s2 + $0x58] sm:$0xff] %v430_v27 }
 0x16a   :  { %445 = vst [vmem:[%s1025_s2 + $0x50] sm:$0xff] %v429_v47 }
 0x16c   :  { %v399_v45 = vpop.permute.xlu1 %398 }
 0x16d   :  { %v417_v20 = vmul.f32 %v926_v34, %v399_v45  ;;  %v397_v51 = vpop.permute.xlu0 %396 }
 0x16e   :  { %v416_v13 = vmul.f32 %v926_v34, %v397_v51 }
 0x16f   :  { %v433_v52 = vadd.f32 %v417_v20, %v368_v37 }
 0x170   :  { %v432_v17 = vadd.f32 %v416_v13, %v922_v3 }
 0x171   :  { %449 = vst [vmem:[%s1025_s2 + $0x70] sm:$0xff] %v433_v52 }
 0x172   :  { %448 = vst [vmem:[%s1025_s2 + $0x68] sm:$0xff] %v432_v17 }

</bundles_post_ra>
